<compile_context>
chip_gen: v7x
topology: tpu7x:2x2x1
jax: 0.10.0
libtpu: 0.0.40
codegen_flags: <defaults>
</compile_context>

<pallas_src>
import jax
import jax.numpy as jnp
from jax.experimental import pallas as pl
from jax.experimental.pallas import tpu as pltpu

_LANE = 128
_VMEM_LIMIT_BYTES = 32 * 1024 * 1024  # safe on v5e/v6e (128 MiB) and v7x (64 MiB)


def _block_budget_bytes():
    """Per-block byte budget so 2x(in)+2x(out) double-buffers stay well under VMEM."""
    try:
        vmem = pltpu.get_tpu_info().vmem_capacity_bytes
    except Exception:
        vmem = 0
    # v5e/v6e: 128 MiB physical -> roomier tiles; v7x (64 MiB): stay tight.
    return (4 << 20) if vmem >= (100 << 20) else (2 << 20)


def _sublane_align(dtype):
    itemsize = jnp.dtype(dtype).itemsize
    return max(8, 8 * (4 // max(itemsize, 1)))  # f32:8, bf16:16, int8:32


def _round_down(v, m):
    return max(m, (v // m) * m)


def _cost(x):
    # Purely memory bound: tell XLA so it overlaps surrounding compute.
    return pl.CostEstimate(flops=0, transcendentals=0,
                           bytes_accessed=2 * x.size * x.dtype.itemsize)


def _params(grid):
    return pltpu.CompilerParams(
        dimension_semantics=("parallel",) * len(grid),
        vmem_limit_bytes=_VMEM_LIMIT_BYTES,
    )


def _copy_kernel(x_ref, o_ref):
    o_ref[...] = x_ref[...]


def _minor_transpose_kernel(x_ref, o_ref):
    # Transpose the last two (sublane/lane) dims of the block (XLU transpose).
    o_ref[...] = jnp.swapaxes(x_ref[...], -2, -1)


# ---------------------------------------------------------------------------
# Path 1: swap of the last two (tiled) dims.
# ---------------------------------------------------------------------------
def _transpose_minor(x, out_sds, budget):
    nd = x.ndim
    S, L = x.shape[-2], x.shape[-1]
    itemsize = x.dtype.itemsize
    max_elems = max(budget // itemsize, _LANE * _LANE)

    # (TM, TN) must be valid both as the (TM, TN) input block and the (TN, TM)
    # output block: each is either the full dim or a multiple of 128.
    def pick(full, cap):
        return full if full <= cap else _round_down(cap, _LANE)

    side = max(int(max_elems ** 0.5), _LANE)
    TM = pick(S, side)
    TN = pick(L, side)
    if TN < L:                     # lane-dense first: grow the lane tile
        TN = pick(L, max(max_elems // max(TM, 1), _LANE))
    elif TM < S:
        TM = pick(S, max(max_elems // max(TN, 1), _LANE))

    # Fold leading batch into the block when the whole plane fits: per-step DMA
    # volume then dwarfs the ~0.35us per-step fixed overhead.
    Bt = 1
    if nd >= 3 and TM == S and TN == L:
        plane = max(S * L, 1)
        Bt = max(1, min(x.shape[0], max_elems // plane))

    if nd >= 3:
        in_blk = (Bt,) + (1,) * (nd - 3) + (TM, TN)
        out_blk = (Bt,) + (1,) * (nd - 3) + (TN, TM)
        grid = ((pl.cdiv(x.shape[0], Bt),) + tuple(x.shape[1:nd - 2])
                + (pl.cdiv(S, TM), pl.cdiv(L, TN)))
    else:
        in_blk = (TM, TN)
        out_blk = (TN, TM)
        grid = (pl.cdiv(S, TM), pl.cdiv(L, TN))

    def in_idx(*g):
        return g

    def out_idx(*g):
        return g[:-2] + (g[-1], g[-2])   # swap the two minor block indices

    return pl.pallas_call(
        _minor_transpose_kernel,
        out_shape=out_sds,
        grid=grid,
        in_specs=[pl.BlockSpec(in_blk, in_idx)],
        out_specs=pl.BlockSpec(out_blk, out_idx),
        compiler_params=_params(grid),
        cost_estimate=_cost(x),
    )(x)


# ---------------------------------------------------------------------------
# Path 2: swap of two leading (untiled) dims — pure DMA placement.
# ---------------------------------------------------------------------------
def _transpose_leading(x, d1, d2, out_sds, budget):
    # TODO(synk): when this feeds another Pallas kernel, fuse the swap into the
    # consumer's input index_map and skip this HBM round trip entirely.
    nd = x.ndim
    shape = x.shape
    S, L = shape[-2], shape[-1]
    itemsize = x.dtype.itemsize
    sub = _sublane_align(x.dtype)

    others = [i for i in range(nd - 2) if i not in (d1, d2)]
    other_prod = 1
    for i in others:
        other_prod *= shape[i]

    def minor_tiles(minor_budget):
        max_elems = max(minor_budget // itemsize, sub * _LANE)
        tl_cap = max(_LANE, max_elems // sub)
        TL = L if L <= tl_cap else _round_down(tl_cap, _LANE)
        ts_cap = max(sub, max_elems // TL)
        TS = S if S <= ts_cap else _round_down(ts_cap, sub)
        return TS, TL

    # Fold non-swapped leading dims into the block (bigger contiguous DMAs,
    # fewer grid steps), unless that alone would already blow the budget.
    fold = other_prod * sub * _LANE * itemsize <= budget
    if fold:
        TS, TL = minor_tiles(budget // max(other_prod, 1))
        blk = [1] * (nd - 2) + [TS, TL]
        for i in others:
            blk[i] = shape[i]
        blk = tuple(blk)
        grid = (shape[d1], shape[d2], pl.cdiv(S, TS), pl.cdiv(L, TL))

        def in_idx(a, b, i, j):
            lead = [0] * (nd - 2)
            lead[d1], lead[d2] = a, b
            return tuple(lead) + (i, j)

        def out_idx(a, b, i, j):
            lead = [0] * (nd - 2)
            lead[d1], lead[d2] = b, a       # swapped placement
            return tuple(lead) + (i, j)
    else:
        TS, TL = minor_tiles(budget)
        blk = (1,) * (nd - 2) + (TS, TL)
        grid = tuple(shape[:nd - 2]) + (pl.cdiv(S, TS), pl.cdiv(L, TL))

        def in_idx(*g):
            return g

        def out_idx(*g):
            g = list(g)
            g[d1], g[d2] = g[d2], g[d1]
            return tuple(g)

    return pl.pallas_call(
        _copy_kernel,
        out_shape=out_sds,
        grid=grid,
        in_specs=[pl.BlockSpec(blk, in_idx)],
        out_specs=pl.BlockSpec(blk, out_idx),
        compiler_params=_params(grid),
        cost_estimate=_cost(x),
    )(x)


# ---------------------------------------------------------------------------
# Path 3: mixed — one leading dim swapped with a tiled (sublane/lane) dim.
# ---------------------------------------------------------------------------
def _transpose_mixed(x, d1, d2, out_sds, budget):
    nd = x.ndim
    shape = x.shape
    S, L = shape[-2], shape[-1]
    n1 = shape[d1]
    itemsize = x.dtype.itemsize
    sub = _sublane_align(x.dtype)
    d2_is_lane = (d2 == nd - 1)
    max_elems = max(budget // itemsize, sub * _LANE * _LANE)

    if d2_is_lane:
        # T1 lands on the OUTPUT lane axis -> multiple of 128 (or full n1).
        t1_cap = max(_LANE, max_elems // (sub * _LANE))
        T1 = n1 if n1 <= t1_cap else _round_down(t1_cap, _LANE)
        tl_cap = max(_LANE, max_elems // (T1 * sub))
        TL = L if L <= tl_cap else _round_down(tl_cap, _LANE)
        ts_cap = max(sub, max_elems // (T1 * TL))
        TS = S if S <= ts_cap else _round_down(ts_cap, sub)
    else:
        # T1 lands on the OUTPUT sublane axis -> multiple of `sub` (or full n1).
        tl_cap = max(_LANE, max_elems // (sub * sub))
        TL = L if L <= tl_cap else _round_down(tl_cap, _LANE)
        t1_cap = max(sub, max_elems // (TL * sub))
        T1 = n1 if n1 <= t1_cap else _round_down(t1_cap, sub)
        ts_cap = max(sub, max_elems // (TL * T1))
        TS = S if S <= ts_cap else _round_down(ts_cap, sub)

    in_blk = [1] * nd
    in_blk[d1] = T1
    in_blk[-2], in_blk[-1] = TS, TL
    out_blk = [1] * nd
    out_blk[d1] = TL if d2_is_lane else TS
    if d2_is_lane:
        out_blk[-2], out_blk[-1] = TS, T1
    else:
        out_blk[-2], out_blk[-1] = T1, TL

    grid = tuple(pl.cdiv(shape[i], in_blk[i]) if i == d1 else shape[i]
                 for i in range(nd - 2)) + (pl.cdiv(S, TS), pl.cdiv(L, TL))
    d2_pos = nd - 1 if d2_is_lane else nd - 2

    def in_idx(*g):
        return g

    def out_idx(*g):
        g = list(g)
        g[d1], g[d2_pos] = g[d2_pos], g[d1]   # swapped block placement
        return tuple(g)

    def mixed_kernel(x_ref, o_ref):
        # TODO(synk): the in-tile major<->minor relayout may hit Mosaic
        # transpose-permutation limits / be slow for huge tiles; a two-stage
        # (8,128)-blocked transpose (or consumer-side fusion) is the upgrade.
        o_ref[...] = jnp.swapaxes(x_ref[...], d1, d2)

    return pl.pallas_call(
        mixed_kernel,
        out_shape=out_sds,
        grid=grid,
        in_specs=[pl.BlockSpec(tuple(in_blk), in_idx)],
        out_specs=pl.BlockSpec(tuple(out_blk), out_idx),
        compiler_params=_params(grid),
        cost_estimate=_cost(x),
    )(x)


def pallas_transpose(x, dim1, dim2):
    nd = x.ndim
    if nd == 0:
        return x
    d1, d2 = sorted((dim1 % nd, dim2 % nd))
    if d1 == d2:
        return x

    out_shape = list(x.shape)
    out_shape[d1], out_shape[d2] = out_shape[d2], out_shape[d1]
    out_sds = jax.ShapeDtypeStruct(tuple(out_shape), x.dtype)
    budget = _block_budget_bytes()

    if d1 >= nd - 2:
        return _transpose_minor(x, out_sds, budget)
    if d2 <= nd - 3:
        return _transpose_leading(x, d1, d2, out_sds, budget)
    return _transpose_mixed(x, d1, d2, out_sds, budget)


class Transpose:
    """Pallas equivalent of hmr4d.utils.net_utils.Transpose (no parameters)."""

    def __init__(self, dim1, dim2):
        self.dim1 = dim1
        self.dim2 = dim2

    def __call__(self, x):
        return pallas_transpose(x, self.dim1, self.dim2)


if __name__ == "__main__":
    key = jax.random.PRNGKey(0)
    k1, k2 = jax.random.split(key)

    # Canonical hmr4d usage: Transpose(1, 2) on a (B, C, L) conv1d activation.
    x3 = jax.random.normal(k1, (2, 32, 128), dtype=jnp.float32)
    y3 = Transpose(1, 2)(x3)
    jax.block_until_ready(y3)
    assert y3.shape == (2, 128, 32), y3.shape
    assert bool(jnp.array_equal(y3, jnp.swapaxes(x3, 1, 2)))

    # 4D, last-two-dims swap (tiled + batch-folded minor-transpose path).
    x4 = jax.random.normal(k2, (2, 4, 16, 128), dtype=jnp.float32)
    y4 = Transpose(2, 3)(x4)
    jax.block_until_ready(y4)
    assert y4.shape == (2, 4, 128, 16), y4.shape
    assert bool(jnp.array_equal(y4, jnp.swapaxes(x4, 2, 3)))

    # 4D, leading-dims swap (pure DMA-placement copy path).
    y4b = Transpose(0, 1)(x4)
    jax.block_until_ready(y4b)
    assert y4b.shape == (4, 2, 16, 128), y4b.shape
    assert bool(jnp.array_equal(y4b, jnp.swapaxes(x4, 0, 1)))

    print("KERNEL_OK")
</pallas_src>

<mosaic_0001>
module attributes {stable_mosaic.version = 11 : i64} {
  func.func @_minor_transpose_kernel(%arg0: i32, %arg1: i32, %arg2: i32, %arg3: memref<2x32x128xf32, #tpu.memory_space<vmem>>, %arg4: memref<2x128x32xf32, #tpu.memory_space<vmem>>) attributes {dimension_semantics = [#tpu.dimension_semantics<parallel>, #tpu.dimension_semantics<parallel>, #tpu.dimension_semantics<parallel>], iteration_bounds = array<i64: 1, 1, 1>, scalar_prefetch = 0 : i64, scratch_operands = 0 : i64, tpu.core_type = #tpu.core_type<tc>, window_params = [{transform_indices = @transform_0, window_bounds = array<i64: 2, 32, 128>}, {transform_indices = @transform_1, window_bounds = array<i64: 2, 128, 32>}]} {
    %c0 = arith.constant 0 : index
    %c0_0 = arith.constant 0 : index
    %c0_1 = arith.constant 0 : index
    %0 = vector.load %arg3[%c0, %c0_0, %c0_1] : memref<2x32x128xf32, #tpu.memory_space<vmem>>, vector<2x32x128xf32>
    %1 = tpu.transpose %0, [0, 2, 1] : vector<2x32x128xf32> -> vector<2x128x32xf32>
    %c0_2 = arith.constant 0 : index
    %c0_3 = arith.constant 0 : index
    %c0_4 = arith.constant 0 : index
    %2 = vector.load %arg4[%c0_2, %c0_3, %c0_4] : memref<2x128x32xf32, #tpu.memory_space<vmem>>, vector<2x128x32xf32>
    tpu.vector_store %arg4[%c0_2, %c0_3, %c0_4], %1 {strides = array<i32>} : memref<2x128x32xf32, #tpu.memory_space<vmem>>, vector<2x128x32xf32>,
    return
  }
  func.func @transform_0(%arg0: i32, %arg1: i32, %arg2: i32) -> (i32, i32, i32) {
    %c0_i32 = arith.constant 0 : i32
    return %arg0, %arg1, %arg2 : i32, i32, i32
  }
  func.func @transform_1(%arg0: i32, %arg1: i32, %arg2: i32) -> (i32, i32, i32) {
    %c0_i32 = arith.constant 0 : i32
    return %arg0, %arg2, %arg1 : i32, i32, i32
  }
}

</mosaic_0001>

<bundles_post_ra>
// kernel: tpu_custom_call.1
= control target key start
LH: loop header
LB: loop body
LE: loop exit
PB: predicated region body
PF: predicated region fallthrough
CT: control target
= control target key end

     0   :  { %6 = vsyncpa [#allocation3], 0  ;;  %s160_s6 = smov [#allocation2]   ;;  %s313_s0 = inlined_call_operand.hbm [shape: f32[2,32,128], index: 0, kind: input, shape index: {}]   ;;  %s314_s1 = inlined_call_operand.vmem [shape: f32[2,128,32], index: 1, kind: output, shape index: {}]  }
   0x1   :  { %s12_s7 = sshll.u32 %s160_s6, 4  ;;  %s136_s10 = scalar_lea.hbm %s313_s0, 1024  ;;  %s13_s7 = int_to_ptr.vmem [resolvable:$true] %s12_s7 }
   0x2   :  { %p137_p0 = scmp.ne.s32.totalorder %s313_s0, %s136_s10  ;;  %p140_p1 = scmp.lt.u32.totalorder %s136_s10, %s313_s0 }
   0x4   :  { %p142_p2 = pnand %p140_p1, %p137_p0 }
   0x6   :  { %145 = shalt.err (!%p142_p2)
}
   0x7   :  { %s146_s15 = scalar_lea.vmem %s13_s7, 1024  ;;  %p151_p4 = scmp.lt.s32.totalorder %s13_s7, %s13_s7 }
   0x8   :  { %p147_p3 = scmp.ne.s32.totalorder %s13_s7, %s146_s15  ;;  %p152_p5 = scmp.lt.s32.totalorder %s146_s15, %s146_s15 }
   0xa   :  { %p153_p6 = por %p152_p5, %p151_p4 }
   0xc   :  { %p154_p7 = pnand %p153_p6, %p147_p3 }
   0xe   :  { %157 = shalt.err (!%p154_p7)
}
   0xf   :  { %s161_s16 = smov 128   ;;  %s162_s17 = smov 8  }
  0x10   :  { %18 = dma.hbm_to_vmem [thread:$0]  %s313_s0, 1024, %s13_s7, [#allocation3], %s161_s16, %s161_s16, %s162_s17  }
  0x11   :  { %158 = dma.done.wait [#allocation3], 1024  }
  0x12   :  { %159 = vsyncadd [#allocation3], 4294966272  ;;  %v26_v0 = vld [vmem:[#allocation2 + $0x20] sm:$0xff]  ;;  %v27_v2 = vld [vmem:[#allocation2 + $0x28] sm:$0xff]  ;;  %vm94_vm0 = vcmask 261120  }
  0x13   :  { %v22_v1 = vld [vmem:[#allocation2] sm:$0xff]  ;;  %62 = vxpose.xlu1.b32.start [1/4] (short) %v26_v0, 128  ;;  %v23_v3 = vld [vmem:[#allocation2 + $0x8] sm:$0xff]  ;;  %v28_v4 = vld [vmem:[#allocation2 + $0x30] sm:$0xff] }
  0x14   :  { %30 = vxpose.xlu0.b32.start [1/4] (short) %v22_v1, 128  ;;  %v24_v5 = vld [vmem:[#allocation2 + $0x10] sm:$0xff]  ;;  %v29_v6 = vld [vmem:[#allocation2 + $0x38] sm:$0xff] }
  0x15   :  { %v25_v7 = vld [vmem:[#allocation2 + $0x18] sm:$0xff] }
  0x17   :  { %63 = vxpose.xlu1.b32.cont [2/4] (short) %v27_v2, 128 }
  0x18   :  { %31 = vxpose.xlu0.b32.cont [2/4] (short) %v23_v3, 128 }
  0x1b   :  { %64 = vxpose.xlu1.b32.cont [3/4] (short) %v28_v4, 128 }
  0x1c   :  { %32 = vxpose.xlu0.b32.cont [3/4] (short) %v24_v5, 128 }
  0x1f   :  { %65 = vxpose.xlu1.b32.end [4/4] (short) %v29_v6, 128 }
  0x20   :  { %33 = vxpose.xlu0.b32.end [4/4] (short) %v25_v7, 128 }
  0x93   :  { %v78_v8 = vpop.trf.xlu1 }
  0x94   :  { %v46_v9 = vpop.trf.xlu0  ;;  %111 = vst.msk [vmem:[%s314_s1 + $0x80] sm:$0xff] %vm94_vm0, %v78_v8 }
  0x95   :  { %95 = vst.msk [vmem:[%s314_s1] sm:$0xff] %vm94_vm0, %v46_v9 }
  0x97   :  { %v79_v10 = vpop.trf.xlu1 }
  0x98   :  { %v47_v11 = vpop.trf.xlu0  ;;  %112 = vst.msk [vmem:[%s314_s1 + $0x88] sm:$0xff] %vm94_vm0, %v79_v10 }
  0x99   :  { %96 = vst.msk [vmem:[%s314_s1 + $0x8] sm:$0xff] %vm94_vm0, %v47_v11 }
  0x9b   :  { %v80_v12 = vpop.trf.xlu1 }
  0x9c   :  { %v48_v13 = vpop.trf.xlu0  ;;  %113 = vst.msk [vmem:[%s314_s1 + $0x90] sm:$0xff] %vm94_vm0, %v80_v12 }
  0x9d   :  { %97 = vst.msk [vmem:[%s314_s1 + $0x10] sm:$0xff] %vm94_vm0, %v48_v13 }
  0x9f   :  { %v81_v14 = vpop.trf.xlu1 }
  0xa0   :  { %v49_v15 = vpop.trf.xlu0  ;;  %114 = vst.msk [vmem:[%s314_s1 + $0x98] sm:$0xff] %vm94_vm0, %v81_v14 }
  0xa1   :  { %98 = vst.msk [vmem:[%s314_s1 + $0x18] sm:$0xff] %vm94_vm0, %v49_v15 }
  0xa3   :  { %v82_v16 = vpop.trf.xlu1 }
  0xa4   :  { %v50_v17 = vpop.trf.xlu0  ;;  %115 = vst.msk [vmem:[%s314_s1 + $0xa0] sm:$0xff] %vm94_vm0, %v82_v16 }
  0xa5   :  { %99 = vst.msk [vmem:[%s314_s1 + $0x20] sm:$0xff] %vm94_vm0, %v50_v17 }
  0xa7   :  { %v83_v18 = vpop.trf.xlu1 }
  0xa8   :  { %v51_v19 = vpop.trf.xlu0  ;;  %116 = vst.msk [vmem:[%s314_s1 + $0xa8] sm:$0xff] %vm94_vm0, %v83_v18 }
  0xa9   :  { %100 = vst.msk [vmem:[%s314_s1 + $0x28] sm:$0xff] %vm94_vm0, %v51_v19 }
  0xab   :  { %v84_v20 = vpop.trf.xlu1 }
  0xac   :  { %v52_v21 = vpop.trf.xlu0  ;;  %117 = vst.msk [vmem:[%s314_s1 + $0xb0] sm:$0xff] %vm94_vm0, %v84_v20 }
  0xad   :  { %101 = vst.msk [vmem:[%s314_s1 + $0x30] sm:$0xff] %vm94_vm0, %v52_v21 }
  0xaf   :  { %v85_v22 = vpop.trf.xlu1 }
  0xb0   :  { %v53_v23 = vpop.trf.xlu0  ;;  %118 = vst.msk [vmem:[%s314_s1 + $0xb8] sm:$0xff] %vm94_vm0, %v85_v22 }
  0xb1   :  { %102 = vst.msk [vmem:[%s314_s1 + $0x38] sm:$0xff] %vm94_vm0, %v53_v23 }
  0xb3   :  { %v86_v24 = vpop.trf.xlu1 }
  0xb4   :  { %v54_v25 = vpop.trf.xlu0  ;;  %119 = vst.msk [vmem:[%s314_s1 + $0xc0] sm:$0xff] %vm94_vm0, %v86_v24 }
  0xb5   :  { %103 = vst.msk [vmem:[%s314_s1 + $0x40] sm:$0xff] %vm94_vm0, %v54_v25 }
  0xb7   :  { %v87_v26 = vpop.trf.xlu1 }
  0xb8   :  { %v55_v27 = vpop.trf.xlu0  ;;  %120 = vst.msk [vmem:[%s314_s1 + $0xc8] sm:$0xff] %vm94_vm0, %v87_v26 }
  0xb9   :  { %104 = vst.msk [vmem:[%s314_s1 + $0x48] sm:$0xff] %vm94_vm0, %v55_v27 }
  0xbb   :  { %v88_v28 = vpop.trf.xlu1 }
  0xbc   :  { %v56_v29 = vpop.trf.xlu0  ;;  %121 = vst.msk [vmem:[%s314_s1 + $0xd0] sm:$0xff] %vm94_vm0, %v88_v28 }
  0xbd   :  { %105 = vst.msk [vmem:[%s314_s1 + $0x50] sm:$0xff] %vm94_vm0, %v56_v29 }
  0xbf   :  { %v89_v30 = vpop.trf.xlu1 }
  0xc0   :  { %v57_v31 = vpop.trf.xlu0  ;;  %122 = vst.msk [vmem:[%s314_s1 + $0xd8] sm:$0xff] %vm94_vm0, %v89_v30 }
  0xc1   :  { %106 = vst.msk [vmem:[%s314_s1 + $0x58] sm:$0xff] %vm94_vm0, %v57_v31 }
  0xc3   :  { %v90_v32 = vpop.trf.xlu1 }
  0xc4   :  { %v58_v33 = vpop.trf.xlu0  ;;  %123 = vst.msk [vmem:[%s314_s1 + $0xe0] sm:$0xff] %vm94_vm0, %v90_v32 }
  0xc5   :  { %107 = vst.msk [vmem:[%s314_s1 + $0x60] sm:$0xff] %vm94_vm0, %v58_v33 }
  0xc7   :  { %v91_v34 = vpop.trf.xlu1 }
  0xc8   :  { %v59_v35 = vpop.trf.xlu0  ;;  %124 = vst.msk [vmem:[%s314_s1 + $0xe8] sm:$0xff] %vm94_vm0, %v91_v34 }
  0xc9   :  { %108 = vst.msk [vmem:[%s314_s1 + $0x68] sm:$0xff] %vm94_vm0, %v59_v35 }
  0xcb   :  { %v92_v36 = vpop.trf.xlu1 }
  0xcc   :  { %v60_v37 = vpop.trf.xlu0  ;;  %125 = vst.msk [vmem:[%s314_s1 + $0xf0] sm:$0xff] %vm94_vm0, %v92_v36 }
  0xcd   :  { %109 = vst.msk [vmem:[%s314_s1 + $0x70] sm:$0xff] %vm94_vm0, %v60_v37 }
  0xcf   :  { %v93_v38 = vpop.trf.xlu1 }
  0xd0   :  { %v61_v39 = vpop.trf.xlu0  ;;  %126 = vst.msk [vmem:[%s314_s1 + $0xf8] sm:$0xff] %vm94_vm0, %v93_v38 }
  0xd1   :  { %110 = vst.msk [vmem:[%s314_s1 + $0x78] sm:$0xff] %vm94_vm0, %v61_v39 }
  0xd2   :  { %131 = vsyncpa [#allocation3], 1 }

</bundles_post_ra>
